<compile_context>
chip_gen: v5e
topology: v5e:2x2
jax: 0.10.0
libtpu: 0.0.40
codegen_flags: <defaults>
</compile_context>

<pallas_src>
import functools

import jax
import jax.numpy as jnp
from jax.experimental import pallas as pl
from jax.experimental.pallas import tpu as pltpu


def _round_up(x, m):
    return (x + m - 1) // m * m


def _choose_tiling(m, target_tile=512):
    """Pick a row tile TM (multiple of 16) and the padded row count Mp."""
    m16 = _round_up(max(m, 1), 16)
    if m16 <= target_tile:
        return m16, m16
    return target_tile, _round_up(m, target_tile)


# ----------------------------------------------------------------------------
# Pallas kernels
# ----------------------------------------------------------------------------
def _node_proj_kernel(x_ref, w_ref, o_ref):
    # out = x @ W   (bf16 operands, f32 accumulation)
    o_ref[...] = jnp.dot(
        x_ref[...], w_ref[...], preferred_element_type=jnp.float32
    ).astype(o_ref.dtype)


def _edge_mlp_kernel(ps_ref, pd_ref, ef_ref, we_ref, b_ref, o_ref, *, relu):
    # out = act(P_s + P_d + e @ W_e + b)
    acc = jnp.dot(ef_ref[...], we_ref[...], preferred_element_type=jnp.float32)
    acc = acc + ps_ref[...].astype(jnp.float32) + pd_ref[...].astype(jnp.float32)
    acc = acc + b_ref[...]
    if relu:
        acc = jnp.maximum(acc, 0.0)
    o_ref[...] = acc.astype(o_ref.dtype)


def _node_update_kernel(h_ref, agg_ref, invdeg_ref, wh_ref, wa_ref, b_ref, o_ref):
    # out = relu(h @ W_h + (agg * inv_deg) @ W_a + b)   (mean-agg fused in)
    acc = jnp.dot(h_ref[...], wh_ref[...], preferred_element_type=jnp.float32)
    agg = (agg_ref[...] * invdeg_ref[...]).astype(jnp.bfloat16)
    acc = acc + jnp.dot(agg, wa_ref[...], preferred_element_type=jnp.float32)
    acc = acc + b_ref[...]
    o_ref[...] = jnp.maximum(acc, 0.0).astype(o_ref.dtype)


# ----------------------------------------------------------------------------
# pallas_call wrappers (all M-tiled, weights resident, 'parallel' M axis)
# ----------------------------------------------------------------------------
def pallas_node_proj(x, w, tm):
    mp, kp = x.shape
    _, np_ = w.shape
    return pl.pallas_call(
        _node_proj_kernel,
        out_shape=jax.ShapeDtypeStruct((mp, np_), jnp.bfloat16),
        grid=(mp // tm,),
        in_specs=[
            pl.BlockSpec((tm, kp), lambda i: (i, 0)),
            pl.BlockSpec((kp, np_), lambda i: (0, 0)),
        ],
        out_specs=pl.BlockSpec((tm, np_), lambda i: (i, 0)),
        compiler_params=pltpu.CompilerParams(dimension_semantics=("parallel",)),
    )(x, w)


def pallas_edge_mlp(ps, pd, ef, we, b, tm, relu, out_dtype):
    mp, np_ = ps.shape
    ep = ef.shape[1]
    return pl.pallas_call(
        functools.partial(_edge_mlp_kernel, relu=relu),
        out_shape=jax.ShapeDtypeStruct((mp, np_), out_dtype),
        grid=(mp // tm,),
        in_specs=[
            pl.BlockSpec((tm, np_), lambda i: (i, 0)),
            pl.BlockSpec((tm, np_), lambda i: (i, 0)),
            pl.BlockSpec((tm, ep), lambda i: (i, 0)),
            pl.BlockSpec((ep, np_), lambda i: (0, 0)),
            pl.BlockSpec((1, np_), lambda i: (0, 0)),
        ],
        out_specs=pl.BlockSpec((tm, np_), lambda i: (i, 0)),
        compiler_params=pltpu.CompilerParams(dimension_semantics=("parallel",)),
    )(ps, pd, ef, we, b)


def pallas_node_update(h, agg, inv_deg, wh, wa, b, tm):
    mp, fp = h.shape
    hp = agg.shape[1]
    np_ = wh.shape[1]
    return pl.pallas_call(
        _node_update_kernel,
        out_shape=jax.ShapeDtypeStruct((mp, np_), jnp.bfloat16),
        grid=(mp // tm,),
        in_specs=[
            pl.BlockSpec((tm, fp), lambda i: (i, 0)),
            pl.BlockSpec((tm, hp), lambda i: (i, 0)),
            pl.BlockSpec((tm, 1), lambda i: (i, 0)),
            pl.BlockSpec((fp, np_), lambda i: (0, 0)),
            pl.BlockSpec((hp, np_), lambda i: (0, 0)),
            pl.BlockSpec((1, np_), lambda i: (0, 0)),
        ],
        out_specs=pl.BlockSpec((tm, np_), lambda i: (i, 0)),
        compiler_params=pltpu.CompilerParams(dimension_semantics=("parallel",)),
    )(h, agg, inv_deg, wh, wa, b)


# ----------------------------------------------------------------------------
# Parameter init: split + pad weights ONCE (stored bf16, biases f32)
# ----------------------------------------------------------------------------
def _pad2(w, rp, cp, dtype):
    r, c = w.shape
    return jnp.zeros((rp, cp), dtype).at[:r, :c].set(w.astype(dtype))


def _pad_bias(b, cp):
    return jnp.zeros((1, cp), jnp.float32).at[0, : b.shape[0]].set(b.astype(jnp.float32))


def init_policy_net_params(key, n_in_features, n_classes, n_hidden_layer,
                           hl_factor, edge_dim):
    hidden = hl_factor
    hp = _round_up(hidden, 128)
    ep = _round_up(edge_dim, 128)
    cp = _round_up(n_classes, 128)

    keys = iter(jax.random.split(key, 4 * n_hidden_layer + 2))
    layers = []
    f = n_in_features
    for _ in range(n_hidden_layer):
        fp = _round_up(f, 128)
        w_m = jax.random.normal(next(keys), (2 * f + edge_dim, hidden), jnp.float32) * 0.1
        b_m = jax.random.normal(next(keys), (hidden,), jnp.float32) * 0.01
        w_u = jax.random.normal(next(keys), (f + hidden, hidden), jnp.float32) * 0.1
        b_u = jax.random.normal(next(keys), (hidden,), jnp.float32) * 0.01

        # Split message weight into [src | dst | edge] row blocks; column-concat
        # the src/dst parts so one node-projection matmul yields [P_s | P_d].
        w_m_s, w_m_d, w_m_e = w_m[:f], w_m[f:2 * f], w_m[2 * f:]
        w_m_sd = jnp.zeros((fp, 2 * hp), jnp.bfloat16)
        w_m_sd = w_m_sd.at[:f, :hidden].set(w_m_s.astype(jnp.bfloat16))
        w_m_sd = w_m_sd.at[:f, hp:hp + hidden].set(w_m_d.astype(jnp.bfloat16))

        layers.append(dict(
            w_m_sd=w_m_sd,
            w_m_e=_pad2(w_m_e, ep, hp, jnp.bfloat16),
            b_m=_pad_bias(b_m, hp),
            w_u_h=_pad2(w_u[:f], fp, hp, jnp.bfloat16),
            w_u_a=_pad2(w_u[f:], hp, hp, jnp.bfloat16),
            b_u=_pad_bias(b_u, hp),
        ))
        f = hidden

    fp = _round_up(f, 128)
    w_o = jax.random.normal(next(keys), (2 * f + edge_dim, n_classes), jnp.float32) * 0.1
    b_o = jax.random.normal(next(keys), (n_classes,), jnp.float32) * 0.01
    w_o_s, w_o_d, w_o_e = w_o[:f], w_o[f:2 * f], w_o[2 * f:]
    w_o_sd = jnp.zeros((fp, 2 * cp), jnp.bfloat16)
    w_o_sd = w_o_sd.at[:f, :n_classes].set(w_o_s.astype(jnp.bfloat16))
    w_o_sd = w_o_sd.at[:f, cp:cp + n_classes].set(w_o_d.astype(jnp.bfloat16))

    head = dict(
        w_o_sd=w_o_sd,
        w_o_e=_pad2(w_o_e, ep, cp, jnp.bfloat16),
        b_o=_pad_bias(b_o, cp),
    )
    meta = dict(hidden=hidden, n_classes=n_classes, edge_dim=edge_dim,
                Hp=hp, Ep=ep, Cp=cp)
    return dict(layers=layers, head=head, meta=meta)


# ----------------------------------------------------------------------------
# PolicyNet forward: (node_features, edge_index, edge_feats, gt_edges, post_data)
#                      -> (actor_stats, side_loss)
# ----------------------------------------------------------------------------
def policy_net_forward(params, node_features, edge_index, edge_feats,
                       gt_edges, post_data, normalize_input=True):
    del gt_edges, post_data  # not used by the actor forward path
    meta = params["meta"]
    hp, ep, cp = meta["Hp"], meta["Ep"], meta["Cp"]
    n_classes = meta["n_classes"]
    edge_dim = meta["edge_dim"]

    h = node_features.astype(jnp.float32)
    if normalize_input:
        h = h / jnp.maximum(jnp.max(jnp.abs(h)), 1e-6)

    src = edge_index[0].astype(jnp.int32)
    dst = edge_index[1].astype(jnp.int32)
    n_nodes, n_feat = h.shape
    n_edges = src.shape[0]

    tm_n, n_nodes_p = _choose_tiling(n_nodes)
    tm_e, n_edges_p = _choose_tiling(n_edges)

    # Pad activations / indices once; activations stay padded across layers.
    fp0 = _round_up(n_feat, 128)
    h_p = jnp.zeros((n_nodes_p, fp0), jnp.bfloat16).at[:n_nodes, :n_feat].set(
        h.astype(jnp.bfloat16))
    ef_p = jnp.zeros((n_edges_p, ep), jnp.bfloat16).at[:n_edges, :edge_dim].set(
        edge_feats.astype(jnp.bfloat16))
    src_p = jnp.zeros((n_edges_p,), jnp.int32).at[:n_edges].set(src)
    dst_p = jnp.zeros((n_edges_p,), jnp.int32).at[:n_edges].set(dst)

    # Mean-aggregation normalizer, computed once; fused into the update kernel.
    deg = jnp.zeros((n_nodes_p,), jnp.float32).at[dst].add(1.0)
    inv_deg = (1.0 / jnp.maximum(deg, 1.0))[:, None]   # [n_nodes_p, 1] f32

    for layer in params["layers"]:
        # Per-node projections for messages: [h@W_src | h@W_dst] in one matmul.
        proj = pallas_node_proj(h_p, layer["w_m_sd"], tm_n)       # [NnP, 2*Hp]
        ps = proj[:, :hp][src_p]                                  # [NeP, Hp]
        pd = proj[:, hp:][dst_p]
        msg = pallas_edge_mlp(ps, pd, ef_p, layer["w_m_e"], layer["b_m"],
                              tm_e, relu=True, out_dtype=jnp.bfloat16)
        # Mean aggregation: scatter-add in XLA, inverse-degree scale in kernel.
        agg = jnp.zeros((n_nodes_p, hp), jnp.float32).at[dst].add(
            msg[:n_edges].astype(jnp.float32))
        h_p = pallas_node_update(h_p, agg, inv_deg,
                                 layer["w_u_h"], layer["w_u_a"], layer["b_u"], tm_n)

    # Edge-level actor head.
    head = params["head"]
    proj = pallas_node_proj(h_p, head["w_o_sd"], tm_n)            # [NnP, 2*Cp]
    ps = proj[:, :cp][src_p]
    pd = proj[:, cp:][dst_p]
    actor = pallas_edge_mlp(ps, pd, ef_p, head["w_o_e"], head["b_o"],
                            tm_e, relu=False, out_dtype=jnp.float32)
    actor_stats = actor[:n_edges, :n_classes]

    # TODO(synk): EdgeGnn's side_loss definition is not in the provided source;
    # return a scalar 0.0 placeholder instead of faking its formula.
    side_loss = jnp.float32(0.0)
    return actor_stats, side_loss


# ----------------------------------------------------------------------------
if __name__ == "__main__":
    # Small synthetic graph consistent with the module's signature.
    n_nodes = 16
    n_edges = 32
    n_in_features = 8
    n_classes = 3
    n_hidden_layer = 2
    hl_factor = 32        # hidden width
    edge_dim = 4          # edge feature dim

    key = jax.random.PRNGKey(0)
    k_feat, k_ei, k_ef, k_gt, k_params = jax.random.split(key, 5)

    node_features = jax.random.normal(k_feat, (n_nodes, n_in_features), jnp.float32)
    edge_index = jax.random.randint(k_ei, (2, n_edges), 0, n_nodes, jnp.int32)
    edge_feats = jax.random.normal(k_ef, (n_edges, edge_dim), jnp.float32)
    gt_edges = jax.random.uniform(k_gt, (n_edges,), jnp.float32)
    post_data = False

    params = init_policy_net_params(k_params, n_in_features, n_classes,
                                    n_hidden_layer, hl_factor, edge_dim)

    actor_stats, side_loss = policy_net_forward(
        params, node_features, edge_index, edge_feats, gt_edges, post_data)

    jax.block_until_ready(actor_stats)
    jax.block_until_ready(side_loss)

    assert actor_stats.shape == (n_edges, n_classes), actor_stats.shape
    assert side_loss.shape == (), side_loss.shape
    assert bool(jnp.all(jnp.isfinite(actor_stats)))
    print("KERNEL_OK")
</pallas_src>

<mosaic_0001>
module attributes {stable_mosaic.version = 11 : i64} {
  func.func @_node_proj_kernel(%arg0: i32, %arg1: memref<16x128xbf16, #tpu.memory_space<vmem>>, %arg2: memref<128x256xbf16, #tpu.memory_space<vmem>>, %arg3: memref<16x256xbf16, #tpu.memory_space<vmem>>) attributes {dimension_semantics = [#tpu.dimension_semantics<parallel>], iteration_bounds = array<i64: 1>, scalar_prefetch = 0 : i64, scratch_operands = 0 : i64, tpu.core_type = #tpu.core_type<tc>, window_params = [{transform_indices = @transform_0, window_bounds = array<i64: 16, 128>}, {pipeline_mode = #tpu.pipeline_mode<synchronous>, transform_indices = @transform_1, window_bounds = array<i64: 128, 256>}, {transform_indices = @transform_2, window_bounds = array<i64: 16, 256>}]} {
    %c0 = arith.constant 0 : index
    %c0_0 = arith.constant 0 : index
    %0 = vector.load %arg1[%c0, %c0_0] : memref<16x128xbf16, #tpu.memory_space<vmem>>, vector<16x128xbf16>
    %c0_1 = arith.constant 0 : index
    %c0_2 = arith.constant 0 : index
    %1 = vector.load %arg2[%c0_1, %c0_2] : memref<128x256xbf16, #tpu.memory_space<vmem>>, vector<128x256xbf16>
    %cst = arith.constant dense<0.000000e+00> : vector<16x256xf32>
    %2 = tpu.matmul %0, %1, %cst {dimension_numbers = #tpu.dot_dimension_numbers<[1], [0], [0], [1], [0, 0, 1, 1], [], []>} : vector<16x128xbf16>, vector<128x256xbf16>, vector<16x256xf32> -> vector<16x256xf32>
    %3 = arith.truncf %2 : vector<16x256xf32> to vector<16x256xbf16>
    %c0_3 = arith.constant 0 : index
    %c0_4 = arith.constant 0 : index
    %4 = vector.load %arg3[%c0_3, %c0_4] : memref<16x256xbf16, #tpu.memory_space<vmem>>, vector<16x256xbf16>
    tpu.vector_store %arg3[%c0_3, %c0_4], %3 {strides = array<i32>} : memref<16x256xbf16, #tpu.memory_space<vmem>>, vector<16x256xbf16>,
    return
  }
  func.func @transform_0(%arg0: i32) -> (i32, i32) {
    %c0_i32 = arith.constant 0 : i32
    %c0_i32_0 = arith.constant 0 : i32
    return %arg0, %c0_i32 : i32, i32
  }
  func.func @transform_1(%arg0: i32) -> (i32, i32) {
    %c0_i32 = arith.constant 0 : i32
    %c0_i32_0 = arith.constant 0 : i32
    %c0_i32_1 = arith.constant 0 : i32
    return %c0_i32, %c0_i32_0 : i32, i32
  }
  func.func @transform_2(%arg0: i32) -> (i32, i32) {
    %c0_i32 = arith.constant 0 : i32
    %c0_i32_0 = arith.constant 0 : i32
    return %arg0, %c0_i32 : i32, i32
  }
}

</mosaic_0001>

<bundles_post_ra>
// kernel: tpu_custom_call.1
= control target key start
LH: loop header
LB: loop body
LE: loop exit
PB: predicated region body
PF: predicated region fallthrough
CT: control target
= control target key end

     0   :  { %7 = vsyncpa [#allocation3], 0  ;;  %s407_s0 = inlined_call_operand.hbm [shape: bf16[16,128], index: 0, kind: input, shape index: {}]   ;;  %s408_s1 = inlined_call_operand.hbm [shape: bf16[128,256], index: 1, kind: input, shape index: {}]   ;;  %s409_s2 = inlined_call_operand.hbm [shape: bf16[16,256], index: 2, kind: output, shape index: {}]  }
   0x1   :  { %8 = vsyncpa [#allocation6], 0 }
   0x2   :  { %9 = vsyncpa [#allocation4], 0  ;;  %s14_s11 = sshll.u32 %s407_s0, 4  ;;  %s370_s12 = smov [#allocation2]   ;;  %s15_s11 = int_to_ptr.hbm [resolvable:$true] %s14_s11 }
   0x3   :  { %s16_s13 = sshll.u32 %s370_s12, 4  ;;  %s27_s16 = sshll.u32 %s408_s1, 4  ;;  %s17_s13 = int_to_ptr.vmem [resolvable:$true] %s16_s13  ;;  %s28_s16 = int_to_ptr.hbm [resolvable:$true] %s27_s16 }
   0x4   :  { %s371_s17 = smov 64   ;;  %s372_s18 = smov 4  }
   0x5   :  { %22 = dma.hbm_to_vmem [thread:$0]  %s15_s11, 128, %s17_s13, [#allocation3], %s371_s17, %s371_s17, %s372_s18  }
   0x6   :  { %s373_s19 = smov [#allocation5]   ;;  %s374_s21 = smov 128  }
   0x7   :  { %s29_s20 = sshll.u32 %s373_s19, 4  ;;  %s375_s22 = smov 8   ;;  %s30_s20 = int_to_ptr.vmem [resolvable:$true] %s29_s20 }
   0x8   :  { %35 = dma.hbm_to_vmem [thread:$0]  %s28_s16, 2048, %s30_s20, [#allocation6], %s374_s21, %s374_s21, %s375_s22  }
   0x9   :  { %364 = dma.done.wait [#allocation3], 128  }
   0xa   :  { %365 = vsyncadd [#allocation3], 4294967168 }
   0xb   :  { %366 = dma.done.wait [#allocation6], 2048  }
   0xc   :  { %367 = vsyncadd [#allocation6], 4294965248  ;;  %v262_v0 = vld [vmem:[#allocation5 + $0x70] sm:$0xf]  ;;  %v284_v1 = vld [vmem:[#allocation5 + $0x74] sm:$0xf0] }
   0xd   :  { %v283_v2 = vld [vmem:[#allocation5 + $0x74] sm:$0xf]  ;;  %v263_v3 = vor.u32 %v284_v1, %v262_v0  ;;  %v264_v4 = vld [vmem:[#allocation5 + $0x78] sm:$0xf0]  ;;  %v254_v5 = vld [vmem:[#allocation5 + $0x60] sm:$0xf] }
   0xe   :  { %v282_v6 = vld [vmem:[#allocation5 + $0x64] sm:$0xf0]  ;;  %v267_v7 = vor.u32 %v283_v2, %v264_v4  ;;  %v281_v8 = vld [vmem:[#allocation5 + $0x64] sm:$0xf]  ;;  %v256_v9 = vld [vmem:[#allocation5 + $0x68] sm:$0xf0] }
   0xf   :  { %148 = vmatpush.bf16.msra.mxu0 %v263_v3  ;;  %v255_v10 = vor.u32 %v282_v6, %v254_v5  ;;  %v259_v11 = vor.u32 %v281_v8, %v256_v9  ;;  %v246_v12 = vld [vmem:[#allocation5 + $0x50] sm:$0xf]  ;;  %v280_v13 = vld [vmem:[#allocation5 + $0x54] sm:$0xf0]  ;;  %v279_v14 = vld [vmem:[#allocation5 + $0x54] sm:$0xf] }
  0x10   :  { %162 = vmatpush.bf16.msra.mxu1 %v267_v7  ;;  %v248_v15 = vld [vmem:[#allocation5 + $0x58] sm:$0xf0]  ;;  %v247_v16 = vor.u32 %v280_v13, %v246_v12  ;;  %v238_v18 = vld [vmem:[#allocation5 + $0x40] sm:$0xf]  ;;  %v278_v19 = vld [vmem:[#allocation5 + $0x44] sm:$0xf0] }
  0x11   :  { %v251_v17 = vor.u32 %v279_v14, %v248_v15  ;;  %v277_v20 = vld [vmem:[#allocation5 + $0x44] sm:$0xf]  ;;  %v240_v21 = vld [vmem:[#allocation5 + $0x48] sm:$0xf0]  ;;  %v239_v22 = vor.u32 %v278_v19, %v238_v18  ;;  %v230_v24 = vld [vmem:[#allocation5 + $0x30] sm:$0xf] }
  0x12   :  { %v243_v23 = vor.u32 %v277_v20, %v240_v21  ;;  %v276_v25 = vld [vmem:[#allocation5 + $0x34] sm:$0xf0]  ;;  %v275_v26 = vld [vmem:[#allocation5 + $0x34] sm:$0xf]  ;;  %v232_v27 = vld [vmem:[#allocation5 + $0x38] sm:$0xf0] }
  0x13   :  { %149 = vmatpush.bf16.msra.mxu0 %v255_v10  ;;  %v231_v28 = vor.u32 %v276_v25, %v230_v24  ;;  %v235_v29 = vor.u32 %v275_v26, %v232_v27  ;;  %v222_v30 = vld [vmem:[#allocation5 + $0x20] sm:$0xf]  ;;  %v274_v31 = vld [vmem:[#allocation5 + $0x24] sm:$0xf0]  ;;  %v273_v32 = vld [vmem:[#allocation5 + $0x24] sm:$0xf] }
  0x14   :  { %163 = vmatpush.bf16.msra.mxu1 %v259_v11  ;;  %v224_v33 = vld [vmem:[#allocation5 + $0x28] sm:$0xf0]  ;;  %v223_v34 = vor.u32 %v274_v31, %v222_v30  ;;  %v214_v36 = vld [vmem:[#allocation5 + $0x10] sm:$0xf]  ;;  %v272_v37 = vld [vmem:[#allocation5 + $0x14] sm:$0xf0] }
  0x15   :  { %v227_v35 = vor.u32 %v273_v32, %v224_v33  ;;  %v271_v38 = vld [vmem:[#allocation5 + $0x14] sm:$0xf]  ;;  %v216_v39 = vld [vmem:[#allocation5 + $0x18] sm:$0xf0]  ;;  %v215_v40 = vor.u32 %v272_v37, %v214_v36  ;;  %v206_v42 = vld [vmem:[#allocation5] sm:$0xf] }
  0x16   :  { %v219_v41 = vor.u32 %v271_v38, %v216_v39  ;;  %v270_v43 = vld [vmem:[#allocation5 + $0x4] sm:$0xf0]  ;;  %v269_v44 = vld [vmem:[#allocation5 + $0x4] sm:$0xf]  ;;  %v208_v45 = vld [vmem:[#allocation5 + $0x8] sm:$0xf0] }
  0x17   :  { %150 = vmatpush.bf16.msra.mxu0 %v247_v16  ;;  %v207_v46 = vor.u32 %v270_v43, %v206_v42  ;;  %v211_v47 = vor.u32 %v269_v44, %v208_v45  ;;  %v268_v48 = vld [vmem:[#allocation2] sm:$0xff]  ;;  %s376_s0 = smov [#allocation7]   ;;  %s186_s25 = sshll.u32 %s409_s2, 4  ;;  %s187_s25 = int_to_ptr.hbm [resolvable:$true] %s186_s25 }
  0x18   :  { %164 = vmatpush.bf16.msra.mxu1 %v251_v17  ;;  %s184_s1 = sshll.u32 %s376_s0, 4  ;;  %s185_s1 = int_to_ptr.vmem [resolvable:$true] %s184_s1 }
  0x1b   :  { %151 = vmatpush.bf16.msra.mxu0 %v239_v22 }
  0x1c   :  { %165 = vmatpush.bf16.msra.mxu1 %v243_v23 }
  0x1f   :  { %152 = vmatpush.bf16.msra.mxu0 %v231_v28 }
  0x20   :  { %166 = vmatpush.bf16.msra.mxu1 %v235_v29 }
  0x23   :  { %153 = vmatpush.bf16.msra.mxu0 %v223_v34 }
  0x24   :  { %167 = vmatpush.bf16.msra.mxu1 %v227_v35 }
  0x27   :  { %154 = vmatpush.bf16.msra.mxu0 %v215_v40 }
  0x28   :  { %168 = vmatpush.bf16.msra.mxu1 %v219_v41 }
  0x2b   :  { %155 = vmatpush.bf16.msra.mxu0 %v207_v46 }
  0x2c   :  { %169 = vmatpush.bf16.msra.mxu1 %v211_v47 }
  0x2e   :  { %156 = vmatmul.bf16.vlgmr.msra.gmra.mxu0 %v268_v48 }
  0x2f   :  { %170 = vmatmul.bf16.vlgmr.msra.gmra.mxu1 %v268_v48 }
  0xab   :  { %v157_v49 = vpop.f32.mrf.mxu0 }
  0xac   :  { %v171_v50 = vpop.f32.mrf.mxu1 }
  0xad   :  { %v176_v51 = vpack.c.bf16 %v171_v50, %v157_v49 }
  0xaf   :  { %178 = vst [vmem:[#allocation7] sm:$0xff] %v176_v51 }
  0xb3   :  { %v159_v52 = vpop.f32.mrf.mxu0 }
  0xb4   :  { %v173_v53 = vpop.f32.mrf.mxu1 }
  0xb5   :  { %v177_v54 = vpack.c.bf16 %v173_v53, %v159_v52 }
  0xb7   :  { %179 = vst [vmem:[#allocation7 + $0x8] sm:$0xff] %v177_v54 }
  0xb8   :  { %192 = dma.vmem_to_hbm [thread:$0]  %s185_s1, 256, %s187_s25, [#allocation4], %s374_s21, %s374_s21, %s375_s22  }
  0xb9   :  { %368 = dma.done.wait [#allocation4], 256  }
  0xba   :  { %369 = vsyncadd [#allocation4], 4294967040 }
  0xbb   :  { %197 = vsyncpa [#allocation3], 1 }
  0xbc   :  { %198 = vsyncpa [#allocation6], 1 }
  0xbd   :  { %199 = vsyncpa [#allocation4], 1 }

</bundles_post_ra>
